<compile_context>
chip_gen: v7x
topology: tpu7x:2x2x1
jax: 0.10.0
libtpu: 0.0.40
codegen_flags: <defaults>
</compile_context>

<pallas_src>
import math
from functools import partial

import jax
import jax.numpy as jnp
from jax.experimental import pallas as pl
from jax.experimental.pallas import tpu as pltpu


def _cdiv(a, b):
    return -(-a // b)


def _mlp_kernel(x_ref, w1_ref, b1_ref, w2_ref, b2_ref, o_ref, acc_ref):
    # x_ref:  (tm, C_in)     token tile (resident across the k axis)
    # w1_ref: (C_in, tH)     fc1 weight slice (transposed layout)
    # b1_ref: (1, tH)        fc1 bias slice
    # w2_ref: (tH, C_out)    fc2 weight slice (transposed layout)
    # b2_ref: (1, C_out)     fc2 bias
    # o_ref:  (tm, C_out)    output tile
    # acc_ref:(tm, C_out)    f32 accumulator scratch (persists across k)
    k = pl.program_id(1)

    @pl.when(k == 0)
    def _():
        acc_ref[...] = jnp.zeros_like(acc_ref)

    x = x_ref[...]

    # fc1 slice + exact GELU: 0.5*h*(1+erf(h/sqrt(2)))  (matches nn.GELU default)
    h = jnp.dot(x, w1_ref[...], preferred_element_type=jnp.float32) + b1_ref[...]
    h = 0.5 * h * (1.0 + jax.lax.erf(h * (1.0 / math.sqrt(2.0))))

    # fc2 partial product, accumulated in f32
    acc_ref[...] += jnp.dot(h.astype(w2_ref.dtype), w2_ref[...],
                            preferred_element_type=jnp.float32)

    @pl.when(k == pl.num_programs(1) - 1)
    def _():
        o_ref[...] = (acc_ref[...] + b2_ref[...]).astype(o_ref.dtype)


def _pick_block_h(H, C_in, C_out, itemsize, budget_bytes=8 * 1024 * 1024):
    """Largest hidden tile (multiple of 128 dividing H) whose streamed w1/w2
    slices stay under ~budget_bytes; falls back to full H when H is small or
    not 128-divisible (weights then stay fully resident)."""
    if (C_in + C_out) * H * itemsize <= budget_bytes or H % 128 != 0:
        return H
    tH = 128
    while (H % (tH * 2) == 0
           and (C_in + C_out) * (tH * 2) * itemsize <= budget_bytes):
        tH *= 2
    return tH


@partial(jax.jit, static_argnames=("block_m", "block_h"))
def mlp_forward(x, w1_t, b1, w2_t, b2, block_m=512, block_h=None):
    """x: (B, N, C_in); w1_t: (C_in, H); b1: (H,); w2_t: (H, C_out); b2: (C_out,)."""
    B, N, C_in = x.shape
    H = w1_t.shape[1]
    C_out = w2_t.shape[1]
    M = B * N

    dtype = x.dtype
    itemsize = jnp.dtype(dtype).itemsize
    sub = max(8, 32 // itemsize)  # sublane packing: f32 -> 8, bf16 -> 16

    # --- token (M) tiling: concrete tile, multiple of the sublane packing ---
    m_rounded = _cdiv(M, sub) * sub
    tm = max(sub, (min(block_m, m_rounded) // sub) * sub)
    if _cdiv(m_rounded, tm) < 2:
        # Prefer >= 2 row tiles so DMA/compute pipelining kicks in and both
        # v7x TensorCores get work on the "parallel" axis.
        half = ((m_rounded // 2) // sub) * sub
        if half >= sub:
            tm = half
    n_m = _cdiv(M, tm)
    M_pad = n_m * tm

    # --- hidden (H) tiling: stream weight slices for transformer-scale H ---
    tH = _pick_block_h(H, C_in, C_out, itemsize) if block_h is None else block_h
    assert H % tH == 0 and (tH == H or tH % 128 == 0), (H, tH)
    n_k = H // tH

    x2d = x.reshape(M, C_in)
    if M_pad != M:
        x2d = jnp.pad(x2d, ((0, M_pad - M), (0, 0)))
    b1_2d = b1.reshape(1, H)
    b2_2d = b2.reshape(1, C_out)

    # Advisory cost estimate for the XLA scheduler.
    flops = 2 * M * (C_in * H + H * C_out)
    bytes_accessed = itemsize * (M * C_in + C_in * H + H
                                 + H * C_out + C_out + M * C_out)
    cost = pl.CostEstimate(flops=flops, transcendentals=M * H,
                           bytes_accessed=bytes_accessed)

    # Explicit VMEM budget: double-buffered x/out/weight tiles + acc scratch,
    # with margin; clamped to stay within v7x's 64 MiB physical VMEM.
    vmem_need = (2 * tm * C_in * itemsize           # x tiles (double-buffered)
                 + 2 * tm * C_out * itemsize        # out tiles
                 + 2 * (C_in * tH + tH) * itemsize  # w1 + b1 slices
                 + 2 * (tH * C_out + C_out) * itemsize  # w2 + b2 slices
                 + tm * C_out * 4)                  # f32 accumulator
    vmem_limit = int(min(max(2 * vmem_need, 32 * 1024 * 1024),
                         64 * 1024 * 1024))

    out2d = pl.pallas_call(
        _mlp_kernel,
        out_shape=jax.ShapeDtypeStruct((M_pad, C_out), dtype),
        grid=(n_m, n_k),
        in_specs=[
            pl.BlockSpec((tm, C_in), lambda i, k: (i, 0)),   # x tile (resident over k)
            pl.BlockSpec((C_in, tH), lambda i, k: (0, k)),   # w1 slice
            pl.BlockSpec((1, tH), lambda i, k: (0, k)),      # b1 slice
            pl.BlockSpec((tH, C_out), lambda i, k: (k, 0)),  # w2 slice
            pl.BlockSpec((1, C_out), lambda i, k: (0, 0)),   # b2
        ],
        out_specs=pl.BlockSpec((tm, C_out), lambda i, k: (i, 0)),
        scratch_shapes=[pltpu.VMEM((tm, C_out), jnp.float32)],
        compiler_params=pltpu.CompilerParams(
            dimension_semantics=("parallel", "arbitrary"),
            vmem_limit_bytes=vmem_limit),
        cost_estimate=cost,
    )(x2d, w1_t, b1_2d, w2_t, b2_2d)

    if M_pad != M:
        out2d = out2d[:M]
    return out2d.reshape(B, N, C_out)


def init_mlp_params(key, in_features, hidden_features, out_features,
                    dtype=jnp.float32):
    """Deterministic init mimicking torch.nn.Linear's uniform(-1/sqrt(fan_in), ...)."""
    k1, k2, k3, k4 = jax.random.split(key, 4)
    lim1 = 1.0 / math.sqrt(in_features)
    lim2 = 1.0 / math.sqrt(hidden_features)
    # stored already transposed: (in, out)
    w1_t = jax.random.uniform(k1, (in_features, hidden_features),
                              dtype, -lim1, lim1)
    b1 = jax.random.uniform(k2, (hidden_features,), dtype, -lim1, lim1)
    w2_t = jax.random.uniform(k3, (hidden_features, out_features),
                              dtype, -lim2, lim2)
    b2 = jax.random.uniform(k4, (out_features,), dtype, -lim2, lim2)
    return w1_t, b1, w2_t, b2


def mlp_reference(x, w1_t, b1, w2_t, b2):
    h = jnp.einsum("bnc,ch->bnh", x, w1_t) + b1
    h = 0.5 * h * (1.0 + jax.lax.erf(h / math.sqrt(2.0)))
    return jnp.einsum("bnh,ho->bno", h, w2_t) + b2


if __name__ == "__main__":
    # Small shapes consistent with the module: batch=2, seq=8,
    # in_features=16, hidden_features=32, out_features=16.
    B, N = 2, 8
    in_features, hidden_features, out_features = 16, 32, 16

    key = jax.random.PRNGKey(0)
    kx, kp = jax.random.split(key)
    x = jax.random.normal(kx, (B, N, in_features), dtype=jnp.float32)
    w1_t, b1, w2_t, b2 = init_mlp_params(
        kp, in_features, hidden_features, out_features)

    out = mlp_forward(x, w1_t, b1, w2_t, b2)
    out = jax.block_until_ready(out)

    ref = mlp_reference(x, w1_t, b1, w2_t, b2)
    assert out.shape == (B, N, out_features), out.shape
    assert jnp.allclose(out, ref, atol=1e-5, rtol=1e-5), \
        float(jnp.max(jnp.abs(out - ref)))

    print("KERNEL_OK")
</pallas_src>

<mosaic_0001>
module attributes {stable_mosaic.version = 11 : i64} {
  func.func @_mlp_kernel(%arg0: i32, %arg1: i32, %arg2: memref<8x16xf32, #tpu.memory_space<vmem>>, %arg3: memref<16x32xf32, #tpu.memory_space<vmem>>, %arg4: memref<1x32xf32, #tpu.memory_space<vmem>>, %arg5: memref<32x16xf32, #tpu.memory_space<vmem>>, %arg6: memref<1x16xf32, #tpu.memory_space<vmem>>, %arg7: memref<8x16xf32, #tpu.memory_space<vmem>>, %arg8: memref<8x16xf32, #tpu.memory_space<vmem>>) attributes {dimension_semantics = [#tpu.dimension_semantics<parallel>, #tpu.dimension_semantics<arbitrary>], iteration_bounds = array<i64: 2, 1>, scalar_prefetch = 0 : i64, scratch_operands = 1 : i64, tpu.core_type = #tpu.core_type<tc>, window_params = [{transform_indices = @transform_0, window_bounds = array<i64: 8, 16>}, {transform_indices = @transform_1, window_bounds = array<i64: 16, 32>}, {transform_indices = @transform_2, window_bounds = array<i64: 1, 32>}, {transform_indices = @transform_3, window_bounds = array<i64: 32, 16>}, {pipeline_mode = #tpu.pipeline_mode<synchronous>, transform_indices = @transform_4, window_bounds = array<i64: 1, 16>}, {transform_indices = @transform_5, window_bounds = array<i64: 8, 16>}]} {
    %c0_i32 = arith.constant 0 : i32
    %0 = arith.cmpi eq, %arg1, %c0_i32 : i32
    %1 = arith.extui %0 : i1 to i32
    %c0_i32_0 = arith.constant 0 : i32
    %2 = arith.cmpi ne, %1, %c0_i32_0 : i32
    scf.if %2 {
      %cst_18 = arith.constant 0.000000e+00 : f32
      %25 = vector.broadcast %cst_18 : f32 to vector<8x16xf32>
      %c0_19 = arith.constant 0 : index
      %c0_20 = arith.constant 0 : index
      %26 = vector.load %arg8[%c0_19, %c0_20] : memref<8x16xf32, #tpu.memory_space<vmem>>, vector<8x16xf32>
      tpu.vector_store %arg8[%c0_19, %c0_20], %25 {strides = array<i32>} : memref<8x16xf32, #tpu.memory_space<vmem>>, vector<8x16xf32>,
    } else {
    }
    %c0 = arith.constant 0 : index
    %c0_1 = arith.constant 0 : index
    %3 = vector.load %arg2[%c0, %c0_1] : memref<8x16xf32, #tpu.memory_space<vmem>>, vector<8x16xf32>
    %c0_2 = arith.constant 0 : index
    %c0_3 = arith.constant 0 : index
    %4 = vector.load %arg3[%c0_2, %c0_3] : memref<16x32xf32, #tpu.memory_space<vmem>>, vector<16x32xf32>
    %cst = arith.constant dense<0.000000e+00> : vector<8x32xf32>
    %5 = tpu.matmul %3, %4, %cst {dimension_numbers = #tpu.dot_dimension_numbers<[1], [0], [0], [1], [0, 0, 1, 1], [], []>} : vector<8x16xf32>, vector<16x32xf32>, vector<8x32xf32> -> vector<8x32xf32>
    %c0_4 = arith.constant 0 : index
    %c0_5 = arith.constant 0 : index
    %6 = vector.load %arg4[%c0_4, %c0_5] : memref<1x32xf32, #tpu.memory_space<vmem>>, vector<1x32xf32>
    %7 = vector.broadcast %6 : vector<1x32xf32> to vector<8x32xf32>
    %8 = arith.addf %5, %7 : vector<8x32xf32>
    %cst_6 = arith.constant 5.000000e-01 : f32
    %9 = vector.broadcast %cst_6 : f32 to vector<8x32xf32>
    %10 = arith.mulf %9, %8 : vector<8x32xf32>
    %cst_7 = arith.constant 0.707106769 : f32
    %11 = vector.broadcast %cst_7 : f32 to vector<8x32xf32>
    %12 = arith.mulf %8, %11 : vector<8x32xf32>
    %13 = math.erf %12 : vector<8x32xf32>
    %cst_8 = arith.constant 1.000000e+00 : f32
    %14 = vector.broadcast %cst_8 : f32 to vector<8x32xf32>
    %15 = arith.addf %14, %13 : vector<8x32xf32>
    %16 = arith.mulf %10, %15 : vector<8x32xf32>
    %c0_9 = arith.constant 0 : index
    %c0_10 = arith.constant 0 : index
    %17 = vector.load %arg8[%c0_9, %c0_10] : memref<8x16xf32, #tpu.memory_space<vmem>>, vector<8x16xf32>
    %c0_11 = arith.constant 0 : index
    %c0_12 = arith.constant 0 : index
    %18 = vector.load %arg5[%c0_11, %c0_12] : memref<32x16xf32, #tpu.memory_space<vmem>>, vector<32x16xf32>
    %cst_13 = arith.constant dense<0.000000e+00> : vector<8x16xf32>
    %19 = tpu.matmul %16, %18, %cst_13 {dimension_numbers = #tpu.dot_dimension_numbers<[1], [0], [0], [1], [0, 0, 1, 1], [], []>} : vector<8x32xf32>, vector<32x16xf32>, vector<8x16xf32> -> vector<8x16xf32>
    %20 = arith.addf %17, %19 : vector<8x16xf32>
    %c0_14 = arith.constant 0 : index
    %c0_15 = arith.constant 0 : index
    %21 = vector.load %arg8[%c0_14, %c0_15] : memref<8x16xf32, #tpu.memory_space<vmem>>, vector<8x16xf32>
    tpu.vector_store %arg8[%c0_14, %c0_15], %20 {strides = array<i32>} : memref<8x16xf32, #tpu.memory_space<vmem>>, vector<8x16xf32>,
    %c0_i32_16 = arith.constant 0 : i32
    %22 = arith.cmpi eq, %arg1, %c0_i32_16 : i32
    %23 = arith.extui %22 : i1 to i32
    %c0_i32_17 = arith.constant 0 : i32
    %24 = arith.cmpi ne, %23, %c0_i32_17 : i32
    scf.if %24 {
      %c0_18 = arith.constant 0 : index
      %c0_19 = arith.constant 0 : index
      %25 = vector.load %arg8[%c0_18, %c0_19] : memref<8x16xf32, #tpu.memory_space<vmem>>, vector<8x16xf32>
      %c0_20 = arith.constant 0 : index
      %c0_21 = arith.constant 0 : index
      %26 = vector.load %arg6[%c0_20, %c0_21] : memref<1x16xf32, #tpu.memory_space<vmem>>, vector<1x16xf32>
      %27 = vector.broadcast %26 : vector<1x16xf32> to vector<8x16xf32>
      %28 = arith.addf %25, %27 : vector<8x16xf32>
      %c0_22 = arith.constant 0 : index
      %c0_23 = arith.constant 0 : index
      %29 = vector.load %arg7[%c0_22, %c0_23] : memref<8x16xf32, #tpu.memory_space<vmem>>, vector<8x16xf32>
      tpu.vector_store %arg7[%c0_22, %c0_23], %28 {strides = array<i32>} : memref<8x16xf32, #tpu.memory_space<vmem>>, vector<8x16xf32>,
    } else {
    }
    return
  }
  func.func @transform_0(%arg0: i32, %arg1: i32) -> (i32, i32) {
    %c0_i32 = arith.constant 0 : i32
    %c0_i32_0 = arith.constant 0 : i32
    return %arg0, %c0_i32 : i32, i32
  }
  func.func @transform_1(%arg0: i32, %arg1: i32) -> (i32, i32) {
    %c0_i32 = arith.constant 0 : i32
    %c0_i32_0 = arith.constant 0 : i32
    return %c0_i32, %arg1 : i32, i32
  }
  func.func @transform_2(%arg0: i32, %arg1: i32) -> (i32, i32) {
    %c0_i32 = arith.constant 0 : i32
    %c0_i32_0 = arith.constant 0 : i32
    return %c0_i32, %arg1 : i32, i32
  }
  func.func @transform_3(%arg0: i32, %arg1: i32) -> (i32, i32) {
    %c0_i32 = arith.constant 0 : i32
    %c0_i32_0 = arith.constant 0 : i32
    return %arg1, %c0_i32 : i32, i32
  }
  func.func @transform_4(%arg0: i32, %arg1: i32) -> (i32, i32) {
    %c0_i32 = arith.constant 0 : i32
    %c0_i32_0 = arith.constant 0 : i32
    %c0_i32_1 = arith.constant 0 : i32
    return %c0_i32, %c0_i32_0 : i32, i32
  }
  func.func @transform_5(%arg0: i32, %arg1: i32) -> (i32, i32) {
    %c0_i32 = arith.constant 0 : i32
    %c0_i32_0 = arith.constant 0 : i32
    return %arg0, %c0_i32 : i32, i32
  }
}

</mosaic_0001>

<bundles_post_ra>
// kernel: mlp_forward.1
= control target key start
LH: loop header
LB: loop body
LE: loop exit
PB: predicated region body
PF: predicated region fallthrough
CT: control target
= control target key end

     0   :  { %10 = vsyncpa [#allocation4], 0  ;;  %s964_s0 = inlined_call_operand.vmem [shape: f32[16,16], index: 0, kind: input, shape index: {}]   ;;  %s965_s1 = inlined_call_operand.vmem [shape: f32[16,32], index: 1, kind: input, shape index: {}]   ;;  %s966_s2 = inlined_call_operand.vmem [shape: f32[1,32], index: 2, kind: input, shape index: {}]   ;;  %s967_s3 = inlined_call_operand.vmem [shape: f32[32,16], index: 3, kind: input, shape index: {}]   ;;  %s968_s4 = inlined_call_operand.vmem [shape: f32[1,16], index: 4, kind: input, shape index: {}]   ;;  %s969_s5 = inlined_call_operand.hbm [shape: f32[16,16], index: 5, kind: output, shape index: {}]  }
   0x1   :  { %12 = vsyncpa [#allocation4 + $0x1], 0  ;;  %s824_s18 = smov 0   ;;  %s826_s19 = smov 0  }
   0x2   :  { %s828_s20 = smov 0   ;;  %s830_s21 = smov 0  }
   0x3   :  { %s832_s22 = smov 0   ;;  %s834_s23 = smov 0  }
   0x4 LB: > { %s597_s24 = sadd.s32 4294967295, %s788_s23   ;;  %s598_s25 = sadd.s32 4294967294, %s788_s23   ;;  %s788_s23 = sphi %s834_s23, %s18_s23   ;;  %s784_s22 = sphi %s832_s22, %s976_s22   ;;  %s780_s21 = sphi %s830_s21, %s975_s21   ;;  %s776_s20 = sphi %s828_s20, %s974_s20   ;;  %s772_s19 = sphi %s826_s19, %s973_s19   ;;  %s768_s18 = sphi %s824_s18, %s972_s18  }
   0x5   : > { %s30_s26 = sadd.s32 1, %s784_s22  ;;  %s162_s27 = sadd.s32 1, %s776_s20 }
   0x6   : > { %p32_p0 = scmp.ge.s32.totalorder %s30_s26, 2  ;;  %p172_p1 = scmp.ne.s32.totalorder %s776_s20, %s772_s19 }
   0x7   : > { %p173_p2 = scmp.eq.s32.totalorder %s597_s24, 1  ;;  %p178_p3 = scmp.ne.s32.totalorder %s772_s19, %s768_s18 }
   0x8   : > { %s978_s26 = smov (%p32_p0, %s30_s26), 0  ;;  %p179_p5 = scmp.eq.s32.totalorder %s598_s25, 1 }
   0x9   : > { %p864_p4 = por %p173_p2, %p172_p1  ;;  %s159_s29 = ssub.s32 %s784_s22, %s978_s26 }
   0xa   : > { %p604_p6 = scmp.ge.s32.totalorder %s788_s23, 1  ;;  %p160_p7 = scmp.eq.s32.totalorder %s159_s29, 0 }
   0xb   : > { %p871_p8 = por %p179_p5, %p178_p3  ;;  %p229_p9 = scmp.lt.s32.totalorder %s788_s23, 3 }
   0xc   : > { %s877_s6 = scalar_select %p160_p7, %s776_s20, %s162_s27  }
   0xd   : > { %p230_p10 = pnand %p604_p6, %p229_p9 }
   0xe   : > { %v292_v0 = vld [vmem:[%s965_s1] sm:$0xff] (!%p230_p10)  ;;  %v293_v1 = vld [vmem:[%s965_s1 + $0x8] sm:$0xff] (!%p230_p10)  ;;  %p268_p11 = scmp.lt.s32.totalorder (!%p230_p10), %s780_s21, 1  ;;  %v790_v2 = vmov (!%p230_p10), 0.0|0.0   ;;  %vm791_vm0 = vmmov (!%p230_p10), 0   ;;  %v792_v4 = vmov (!%p230_p10), 0.0  }
   0xf   : > { %233 = sbr.rel (%p230_p10) target bundleno = 496 (0x1f0), region = 40  ;;  %641 = vmatprep.subr.bf16.mxu0 (!%p230_p10), %v790_v2  ;;  %v642_v3 = vpack.c.bf16 (!%p230_p10), %v293_v1, %v292_v0  ;;  %627 = vmatprep.mubr.msk.f32.mxu0 (!%p230_p10), %vm791_vm0, %v792_v4  ;;  %vm289_vm1 = vcmask (!%p230_p10), 130048   ;;  %v381_v6 = vld [vmem:[%s967_s3] sm:$0xff] (!%p230_p10)  ;;  %v382_v7 = vld [vmem:[%s967_s3 + $0x8] sm:$0xff] (!%p230_p10)  ;;  %v383_v9 = vld [vmem:[%s967_s3 + $0x10] sm:$0xff] (!%p230_p10)  ;;  %vm385_vm2 = vcmask (!%p230_p10), 261120  }
  0x10   : > { %290 = vst.msk [vmem:[#allocation2] sm:$0xff] (!%p230_p10), %vm289_vm1, %v792_v4  ;;  %644 = vmatprep.subr.bf16.mxu1 (!%p230_p10), %v790_v2  ;;  %638 = vmatprep.mubr.msk.f32.mxu1 (!%p230_p10), %vm791_vm0, %v792_v4  ;;  %v645_v8 = vpack.c.bf16 (!%p230_p10), %v382_v7, %v381_v6  ;;  %v384_v10 = vld [vmem:[%s967_s3 + $0x18] sm:$0xff] (!%p230_p10)  ;;  %v607_v12 = vld [vmem:[%s966_s2] ss:$0 sm:$0xff] (!%p230_p10) }
  0x11   : > { %643 = vmatpush3.bf16.msra.mxu0 (!%p230_p10), %v642_v3  ;;  %v648_v11 = vpack.c.bf16 (!%p230_p10), %v384_v10, %v383_v9  ;;  %v610_v25 = vld [vmem:[%s968_s4] ss:$0 sm:$0xff] (!%p230_p10) }
  0x12   : > { %646 = vmatpush3.bf16.msra.mxu1 (!%p230_p10), %v645_v8 }
  0x13   : > { %647 = vmatprep.subr.bf16.mxu1 (!%p230_p10), %v790_v2 }
  0x16   : > { %s269_s11 = scalar_select %p268_p11, %s780_s21, 1  ;;  %649 = vmatpush3.bf16.msra.mxu1 %v648_v11 }
  0x17   : > { %v380_v21 = vld [vmem:[#allocation2] sm:$0xff] }
  0x18   : > { %s606_s12 = sshll.u32 %s269_s11, 3  ;;  %s265_s11 = sand.u32 1, %s772_s19  }
  0x19   : > { %s271_s15 = scalar_lea.vmem %s964_s0, %s606_s12  ;;  %s605_s12 = sshll.u32 %s265_s11, 3 }
  0x1a   : > { %v291_v5 = vld [vmem:[%s271_s15] sm:$0xff]  ;;  %s612_s15 = sshll.u32 %s780_s21, 7  ;;  %s267_s16 = scalar_lea.vmem [#allocation3], %s605_s12 }
  0x1b   : > { %628 = vmatmul.mubr.msk.f32.vlgmr.msra.gmra.mrb[0].mxu0 %vm289_vm1, %v291_v5  ;;  %s488_s17 = sshll.u32 %s267_s16, 4  ;;  %s916_s27 = scalar_lea.hbm %s969_s5, %s612_s15  ;;  %s918_s17 = int_to_ptr.vmem [resolvable:$true] %s488_s17 }
  0x1c   : > { %s475_s29 = scalar_lea.sflag [#allocation4], %s265_s11  ;;  %s710_s7 = scalar_lea.vmem %s918_s17, 128 }
  0x1d   : > { %p711_p12 = scmp.ne.s32.totalorder %s918_s17, %s710_s7  ;;  %s793_s21 = smov [#allocation3]  }
  0x1e   : > { %s714_s8 = sshll.u32 %s793_s21, 4  ;;  %s715_s8 = int_to_ptr.vmem [resolvable:$false] %s714_s8 }
  0x1f   : > { %p712_p13 = pnand %p711_p12, %p864_p4  ;;  %s716_s9 = scalar_lea.vmem %s715_s8, 256 }
  0x20   : > { %p717_p1 = scmp.lt.s32.totalorder %s918_s17, %s715_s8  ;;  %p718_p2 = scmp.lt.s32.totalorder %s716_s9, %s710_s7 }
  0x21   : > { %p713_p0 = pneg %p712_p13 }
  0x22   : > { %p719_p3 = por %p718_p2, %p717_p1 }
  0x24   : > { %p720_p5 = pnand %p719_p3, %p713_p0 }
  0xee   : > { %v371_v13 = vpop.f32.mrb[0].mxu0 }
  0xef   : > { %v372_v14 = vadd.f32 %v607_v12, %v371_v13  ;;  %v629_v15 = vpop.f32.mrb[1].mxu0 }
  0xf1   : > { %v376_v16 = vmul.f32 0.70710677, %v372_v14  ;;  %v375_v18 = vmul.f32 0.5, %v372_v14 }
  0xf3   : > { %708 = verf.f32 %v376_v16 }
  0xfd   : > { %v709_v17 = vpop.eup %708 }
  0xfe   : > { %v378_v19 = vadd.f32 1.0, %v709_v17 }
 0x100   : > { %v379_v20 = vmul.f32 %v378_v19, %v375_v18 }
 0x102   : > { %639 = vmatmul.mubr.msk.f32.vlgmr.msra.gmra.mrb[0].mxu1 %vm385_vm2, %v379_v20 }
 0x1d5   : > { %v455_v22 = vpop.f32.mrb[0].mxu1 }
 0x1d6   : > { %v459_v23 = vadd.f32 %v455_v22, %v380_v21  ;;  %v640_v24 = vpop.f32.mrb[1].mxu1 }
 0x1d8   : > { %460 = vst.msk [vmem:[#allocation2] sm:$0xff] %vm289_vm1, %v459_v23 }
 0x1df   : > { %v464_v26 = vld [vmem:[#allocation2] sm:$0xff] }
 0x1e0   : > { %v472_v27 = vadd.f32 %v610_v25, %v464_v26 }
 0x1e2   : > { %473 = vst.msk [vmem:[%s267_s16] sm:$0xff] %vm289_vm1, %v472_v27 }
 0x1e3   : > { %723 = shalt.err (!%p720_p5)
}
 0x1e4   : > { %s724_s10 = scalar_lea.hbm %s916_s27, 128  ;;  %s728_s13 = scalar_lea.hbm %s969_s5, 256 }
 0x1e5   : > { %p725_p6 = scmp.ne.s32.totalorder %s916_s27, %s724_s10  ;;  %p729_p10 = scmp.lt.u32.totalorder %s916_s27, %s969_s5 }
 0x1e6   : > { %p730_p11 = scmp.lt.u32.totalorder %s728_s13, %s724_s10  ;;  %p732_p13 = scmp.lt.u32.totalorder %s724_s10, %s916_s27 }
 0x1e7   : > { %p726_p7 = pnand %p725_p6, %p864_p4 }
 0x1e8   : > { %p731_p12 = por %p730_p11, %p729_p10 }
 0x1e9   : > { %p727_p9 = pneg %p726_p7 }
 0x1ea   : > { %p733_p0 = por %p732_p13, %p731_p12 }
 0x1ec   : > { %p734_p1 = pnand %p733_p0, %p727_p9 }
 0x1ee   : > { %737 = shalt.err (!%p734_p1)
}
 0x1ef   : > { %650 = dma.vmem_to_hbm [thread:$0]  (%p864_p4), %s918_s17, 128, %s916_s27, %s475_s29  }
 0x1f0 PF: > { %p656_p2 = scmp.ge.s32.totalorder %s788_s23, 2  ;;  %s500_s16 = sand.u32 1, %s768_s18  }
 0x1f1   : > { %s501_s24 = scalar_lea.sflag [#allocation4], %s500_s16 }
 0x1f2   : > { %p653_p3 = pnand %p656_p2, %p871_p8 }
 0x1f4   : > { %763 = dma.done.wait (!%p653_p3), %s501_s24, 128  }
 0x1f5   : > { %765 = vsyncadd (!%p653_p3), %s501_s24, 4294967168  ;;  %s18_s23 = sadd.s32 1, %s788_s23   ;;  %s972_s18 = smov %s772_s19 }
 0x1f6   : > { %p15_p5 = scmp.ge.s32.totalorder %s18_s23, 4   ;;  %s973_s19 = smov %s776_s20 }
 0x1f7   : > { %s974_s20 = smov %s877_s6  ;;  %s975_s21 = smov %s784_s22 }
 0x1f8   : > { %s976_s22 = smov %s978_s26  ;;  %17 = sbr.rel (!%p15_p5) target bundleno = 4 (0x4), region = 92 }
 0x1ff   :  { %506 = vsyncpa [#allocation4], 1 }
 0x200   :  { %508 = vsyncpa [#allocation4 + $0x1], 1 }

</bundles_post_ra>
